<compile_context>
chip_gen: v5e
topology: v5e:2x2
jax: 0.10.0
libtpu: 0.0.40
codegen_flags: <defaults>
</compile_context>

<pallas_src>
import functools

import jax
import jax.numpy as jnp
from jax.experimental import pallas as pl
from jax.experimental.pallas import tpu as pltpu

BN_EPS = 1e-5
_VMEM_LIMIT = 32 * 1024 * 1024      # scoped-VMEM cap; safe on v5e/v6e/v7x (never assume 128 MiB)
_TILE_CAP = 16 * 1024               # max lane tile (review item 1)
_TILE_BUDGET = 20 * 1024 * 1024     # VMEM budget used to derive the lane tile


def _cdiv(a, b):
    return -(-a // b)


def _round_up(a, b):
    return _cdiv(a, b) * b


@functools.partial(jax.jit, static_argnames=("stride", "padding"))
def ti_child_block(x, w, b, gamma, beta, *, stride, padding):
    """x: (N, C_in, L) float32 (PyTorch NCL).  Returns (N, C_out, L_out // 2) float32.

    Matches TiChildBlock.forward with BatchNorm1d in training mode (batch statistics).
    The Conv1d bias `b` is accepted but unused: under batch-stat BN it is exactly cancelled
    by the mean subtraction, so dropping it changes nothing numerically in the output.
    """
    del b  # cancelled by training-mode BatchNorm (see docstring)

    N, C_in, L = x.shape
    C_out, c_in_w, k = w.shape
    assert C_in == c_in_w
    s, p = int(stride), int(padding)
    Lpad = L + 2 * p
    L_out = (Lpad - k) // s + 1
    assert L_out >= 2
    # TODO(synk): odd conv output length (MaxPool1d drops the trailing position, but PyTorch BN
    # statistics would still include it) is not handled.
    assert L_out % 2 == 0, "choose shapes giving an even conv output length"
    Lp = L_out // 2
    P = 2 * s                              # interleave period = pool(2) * stride
    d_max = (s + k - 1) // P               # maximum lane shift any tap needs
    assert d_max <= 128, "kernel width too large for the 128-lane halo block"

    # ---- tile / grid derivation: largest lane tile that fits the VMEM budget ----
    per_lane_bytes = 4 * 2 * (P * C_in + C_out)            # double-buffered cur + out blocks
    max_tl = max(128, min(_TILE_CAP, (_TILE_BUDGET // per_lane_bytes) // 128 * 128))
    n_half = max(1, _cdiv(Lp, 2 * max_tl))                 # tiles per half (v7x: 2 parallel halves)
    TL = _round_up(max(1, _cdiv(Lp, 2 * n_half)), 128)     # lane tile: multiple of 128, <= max_tl
    n_tiles = 2 * n_half
    Lp_total = (n_tiles + 1) * TL                          # +1 tile so the halo block always exists
    assert P * Lp_total >= Lpad

    # ---- restructure x ONCE into interleave phases: phases[n, r, c, m] = x_pad[n, c, P*m + r] ----
    x_pad = jnp.pad(x.astype(jnp.float32),
                    ((0, 0), (0, 0), (p, P * Lp_total - L - p)))
    phases = x_pad.reshape(N, C_in, Lp_total, P).transpose(0, 3, 1, 2)   # (N, P, C_in, Lp_total)

    w_t = jnp.transpose(w, (2, 0, 1)).astype(jnp.float32)                # (k, C_out, C_in)

    # Tap plan: conv output 2q   reads x_pad[2qs + j]       -> phase  j % P,      shift  j // P
    #           conv output 2q+1 reads x_pad[2qs + s + j]   -> phase (s+j) % P,   shift (s+j) // P
    even_taps = tuple((j, j % P, j // P) for j in range(k))
    odd_taps = tuple((j, (s + j) % P, (s + j) // P) for j in range(k))

    def conv_pair(cur_ref, halo_ref, w_ref):
        """Recompute the conv for this tile -> (y_even, y_odd), each (C_out, TL) float32."""
        windows, taps = {}, {}

        def tap(r, d):
            if (r, d) not in taps:
                if d == 0:
                    taps[(r, d)] = cur_ref[0, r]                          # (C_in, TL)
                else:
                    if r not in windows:                                  # (C_in, TL + 128)
                        windows[r] = jnp.concatenate(
                            [cur_ref[0, r], halo_ref[0, r]], axis=-1)
                    taps[(r, d)] = jax.lax.slice_in_dim(windows[r], d, d + TL, axis=1)
            return taps[(r, d)]

        def accum(plan):
            y = None
            for j, r, d in plan:
                c = jnp.dot(w_ref[j], tap(r, d), preferred_element_type=jnp.float32)
                y = c if y is None else y + c
            return y

        return accum(even_taps), accum(odd_taps)

    grid = (N, 2, n_half)
    cur_spec = pl.BlockSpec((1, P, C_in, TL),
                            lambda n, h, t: (n, 0, 0, h * n_half + t))
    halo_spec = pl.BlockSpec((1, P, C_in, 128),
                             lambda n, h, t: (n, 0, 0, (h * n_half + t + 1) * (TL // 128)))
    w_spec = pl.BlockSpec((k, C_out, C_in), lambda n, h, t: (0, 0, 0))
    vec_spec = pl.BlockSpec((C_out, 1), lambda n, h, t: (0, 0))
    stat_spec = pl.BlockSpec((1, 1, C_out, 1), lambda n, h, t: (n, h, 0, 0))
    out_spec = pl.BlockSpec((1, C_out, TL), lambda n, h, t: (n, 0, h * n_half + t))

    # ---- pass 1: global (training-mode) batch statistics of the conv output ----
    def stats_kernel(cur_ref, halo_ref, w_ref, sum_ref, sq_ref):
        t = pl.program_id(2)

        @pl.when(t == 0)
        def _init():
            sum_ref[...] = jnp.zeros_like(sum_ref)
            sq_ref[...] = jnp.zeros_like(sq_ref)

        y_e, y_o = conv_pair(cur_ref, halo_ref, w_ref)
        # Mask the lane-padding positions (they can pull real data through the halo).
        base = (pl.program_id(1) * n_half + t) * TL
        lane = jax.lax.broadcasted_iota(jnp.int32, (1, TL), 1)
        mask = ((lane + base) < Lp).astype(jnp.float32)
        y_e = y_e * mask
        y_o = y_o * mask
        sum_ref[0, 0] = sum_ref[0, 0] + (jnp.sum(y_e, axis=1, keepdims=True)
                                         + jnp.sum(y_o, axis=1, keepdims=True))
        sq_ref[0, 0] = sq_ref[0, 0] + (jnp.sum(y_e * y_e, axis=1, keepdims=True)
                                       + jnp.sum(y_o * y_o, axis=1, keepdims=True))

    sums, sumsq = pl.pallas_call(
        stats_kernel,
        grid=grid,
        in_specs=[cur_spec, halo_spec, w_spec],
        out_specs=(stat_spec, stat_spec),
        out_shape=(jax.ShapeDtypeStruct((N, 2, C_out, 1), jnp.float32),
                   jax.ShapeDtypeStruct((N, 2, C_out, 1), jnp.float32)),
        compiler_params=pltpu.CompilerParams(
            dimension_semantics=("parallel", "parallel", "arbitrary"),
            vmem_limit_bytes=_VMEM_LIMIT),
    )(phases, phases, w_t)

    # TODO(synk): single-pass E[y^2]-E[y]^2 variance can cancel badly for huge N*L_out;
    # a centered second pass would fix it at the cost of one more sweep.
    total = jnp.float32(N * L_out)
    mean = jnp.sum(sums, axis=(0, 1)) / total                             # (C_out, 1)
    var = jnp.maximum(jnp.sum(sumsq, axis=(0, 1)) / total - mean * mean, 0.0)
    inv = jax.lax.rsqrt(var + BN_EPS)
    scale = gamma.reshape(C_out, 1).astype(jnp.float32) * inv             # folded BN affine
    shift = beta.reshape(C_out, 1).astype(jnp.float32) - mean * scale
    w_scaled = w_t * scale.reshape(1, C_out, 1)                           # fold scale into weights

    # ---- pass 2: conv (scale-folded) + shift + ReLU + maxpool(2); lane-dense NCL output ----
    def norm_pool_kernel(cur_ref, halo_ref, w_ref, shift_ref, out_ref):
        y_e, y_o = conv_pair(cur_ref, halo_ref, w_ref)
        sh = shift_ref[...]                                               # (C_out, 1)
        z_e = jnp.maximum(y_e + sh, 0.0)
        z_o = jnp.maximum(y_o + sh, 0.0)
        out_ref[0] = jnp.maximum(z_e, z_o).astype(out_ref.dtype)

    out = pl.pallas_call(
        norm_pool_kernel,
        grid=grid,
        in_specs=[cur_spec, halo_spec, w_spec, vec_spec],
        out_specs=out_spec,
        out_shape=jax.ShapeDtypeStruct((N, C_out, n_tiles * TL), jnp.float32),
        compiler_params=pltpu.CompilerParams(
            dimension_semantics=("parallel", "parallel", "parallel"),
            vmem_limit_bytes=_VMEM_LIMIT),
    )(phases, phases, w_scaled, shift)

    return out[:, :, :Lp]   # (N, C_out, Lp) — PyTorch NCL, no transpose needed


def _reference(x, w, b, gamma, beta, *, stride, padding):
    """Pure-JAX reference of the PyTorch forward (training-mode BN)."""
    y = jax.lax.conv_general_dilated(
        x, w, (stride,), [(padding, padding)],
        dimension_numbers=("NCH", "OIH", "NCH")) + b[None, :, None]
    mean = jnp.mean(y, axis=(0, 2), keepdims=True)
    var = jnp.mean((y - mean) ** 2, axis=(0, 2), keepdims=True)
    z = gamma[None, :, None] * (y - mean) * jax.lax.rsqrt(var + BN_EPS) + beta[None, :, None]
    z = jnp.maximum(z, 0.0)
    Lp = z.shape[-1] // 2
    z = z[..., :2 * Lp].reshape(z.shape[0], z.shape[1], Lp, 2)
    return jnp.max(z, axis=-1)


def _run_case(key, *, N, C_in, L, C_out, k, s, p):
    k1, k2, k3, k4, k5 = jax.random.split(key, 5)
    x = jax.random.normal(k1, (N, C_in, L), jnp.float32)
    w = 0.1 * jax.random.normal(k2, (C_out, C_in, k), jnp.float32)
    b = 0.1 * jax.random.normal(k3, (C_out,), jnp.float32)
    gamma = 1.0 + 0.1 * jax.random.normal(k4, (C_out,), jnp.float32)
    beta = 0.1 * jax.random.normal(k5, (C_out,), jnp.float32)

    out = jax.block_until_ready(ti_child_block(x, w, b, gamma, beta, stride=s, padding=p))
    ref = _reference(x, w, b, gamma, beta, stride=s, padding=p)
    assert out.shape == ref.shape, (out.shape, ref.shape)
    err = float(jnp.max(jnp.abs(out - ref)))
    assert jnp.allclose(out, ref, rtol=1e-2, atol=1e-2), err


if __name__ == "__main__":
    key = jax.random.PRNGKey(0)
    k1, k2, k3 = jax.random.split(key, 3)

    # TiChildBlock(inplanes=4, planes=8, k=3, s=1, p=1); input (N=2, C_in=4, L=16)
    _run_case(k1, N=2, C_in=4, L=16, C_out=8, k=3, s=1, p=1)
    # Longer input: exercises multiple lane tiles, the cross-tile halo and the stats mask.
    _run_case(k2, N=2, C_in=4, L=500, C_out=8, k=3, s=1, p=1)
    # Strided conv: exercises the general 2*stride-phase decomposition.
    _run_case(k3, N=2, C_in=3, L=16, C_out=8, k=3, s=2, p=1)

    print("KERNEL_OK")
</pallas_src>

<mosaic_0001>
module attributes {stable_mosaic.version = 11 : i64} {
  func.func @stats_kernel(%arg0: i32, %arg1: i32, %arg2: i32, %arg3: memref<1x2x4x128xf32, #tpu.memory_space<vmem>>, %arg4: memref<1x2x4x128xf32, #tpu.memory_space<vmem>>, %arg5: memref<3x8x4xf32, #tpu.memory_space<vmem>>, %arg6: memref<1x1x8x1xf32, #tpu.memory_space<vmem>>, %arg7: memref<1x1x8x1xf32, #tpu.memory_space<vmem>>) attributes {dimension_semantics = [#tpu.dimension_semantics<parallel>, #tpu.dimension_semantics<parallel>, #tpu.dimension_semantics<arbitrary>], iteration_bounds = array<i64: 2, 2, 1>, scalar_prefetch = 0 : i64, scratch_operands = 0 : i64, tpu.core_type = #tpu.core_type<tc>, window_params = [{transform_indices = @transform_0, window_bounds = array<i64: 1, 2, 4, 128>}, {transform_indices = @transform_1, window_bounds = array<i64: 1, 2, 4, 128>}, {pipeline_mode = #tpu.pipeline_mode<synchronous>, transform_indices = @transform_2, window_bounds = array<i64: 3, 8, 4>}, {transform_indices = @transform_3, window_bounds = array<i64: 1, 1, 8, 1>}, {transform_indices = @transform_4, window_bounds = array<i64: 1, 1, 8, 1>}]} {
    %c0_i32 = arith.constant 0 : i32
    %0 = arith.cmpi eq, %arg2, %c0_i32 : i32
    %1 = arith.extui %0 : i1 to i32
    %c0_i32_0 = arith.constant 0 : i32
    %2 = arith.cmpi ne, %1, %c0_i32_0 : i32
    scf.if %2 {
      %cst_65 = arith.constant 0.000000e+00 : f32
      %79 = vector.broadcast %cst_65 : f32 to vector<1x1x8x1xf32>
      %c0_66 = arith.constant 0 : index
      %c0_67 = arith.constant 0 : index
      %c0_68 = arith.constant 0 : index
      %c0_69 = arith.constant 0 : index
      %80 = vector.load %arg6[%c0_66, %c0_67, %c0_68, %c0_69] : memref<1x1x8x1xf32, #tpu.memory_space<vmem>>, vector<1x1x8x1xf32>
      tpu.vector_store %arg6[%c0_66, %c0_67, %c0_68, %c0_69], %79 {strides = array<i32>} : memref<1x1x8x1xf32, #tpu.memory_space<vmem>>, vector<1x1x8x1xf32>,
      %cst_70 = arith.constant 0.000000e+00 : f32
      %81 = vector.broadcast %cst_70 : f32 to vector<1x1x8x1xf32>
      %c0_71 = arith.constant 0 : index
      %c0_72 = arith.constant 0 : index
      %c0_73 = arith.constant 0 : index
      %c0_74 = arith.constant 0 : index
      %82 = vector.load %arg7[%c0_71, %c0_72, %c0_73, %c0_74] : memref<1x1x8x1xf32, #tpu.memory_space<vmem>>, vector<1x1x8x1xf32>
      tpu.vector_store %arg7[%c0_71, %c0_72, %c0_73, %c0_74], %81 {strides = array<i32>} : memref<1x1x8x1xf32, #tpu.memory_space<vmem>>, vector<1x1x8x1xf32>,
    } else {
    }
    %c0 = arith.constant 0 : index
    %c0_1 = arith.constant 0 : index
    %c0_2 = arith.constant 0 : index
    %3 = vector.load %arg5[%c0, %c0_1, %c0_2] : memref<3x8x4xf32, #tpu.memory_space<vmem>>, vector<1x8x4xf32>
    %4 = vector.shape_cast %3 : vector<1x8x4xf32> to vector<8x4xf32>
    %c0_3 = arith.constant 0 : index
    %c0_4 = arith.constant 0 : index
    %c0_5 = arith.constant 0 : index
    %c0_6 = arith.constant 0 : index
    %5 = vector.load %arg3[%c0_3, %c0_4, %c0_5, %c0_6] : memref<1x2x4x128xf32, #tpu.memory_space<vmem>>, vector<1x1x4x128xf32>
    %6 = vector.shape_cast %5 : vector<1x1x4x128xf32> to vector<4x128xf32>
    %cst = arith.constant dense<0.000000e+00> : vector<8x128xf32>
    %7 = tpu.matmul %4, %6, %cst {dimension_numbers = #tpu.dot_dimension_numbers<[1], [0], [0], [1], [0, 0, 1, 1], [], []>} : vector<8x4xf32>, vector<4x128xf32>, vector<8x128xf32> -> vector<8x128xf32>
    %c1 = arith.constant 1 : index
    %c0_7 = arith.constant 0 : index
    %c0_8 = arith.constant 0 : index
    %8 = vector.load %arg5[%c1, %c0_7, %c0_8] : memref<3x8x4xf32, #tpu.memory_space<vmem>>, vector<1x8x4xf32>
    %9 = vector.shape_cast %8 : vector<1x8x4xf32> to vector<8x4xf32>
    %c0_9 = arith.constant 0 : index
    %c1_10 = arith.constant 1 : index
    %c0_11 = arith.constant 0 : index
    %c0_12 = arith.constant 0 : index
    %10 = vector.load %arg3[%c0_9, %c1_10, %c0_11, %c0_12] : memref<1x2x4x128xf32, #tpu.memory_space<vmem>>, vector<1x1x4x128xf32>
    %11 = vector.shape_cast %10 : vector<1x1x4x128xf32> to vector<4x128xf32>
    %cst_13 = arith.constant dense<0.000000e+00> : vector<8x128xf32>
    %12 = tpu.matmul %9, %11, %cst_13 {dimension_numbers = #tpu.dot_dimension_numbers<[1], [0], [0], [1], [0, 0, 1, 1], [], []>} : vector<8x4xf32>, vector<4x128xf32>, vector<8x128xf32> -> vector<8x128xf32>
    %13 = arith.addf %7, %12 : vector<8x128xf32>
    %c2 = arith.constant 2 : index
    %c0_14 = arith.constant 0 : index
    %c0_15 = arith.constant 0 : index
    %14 = vector.load %arg5[%c2, %c0_14, %c0_15] : memref<3x8x4xf32, #tpu.memory_space<vmem>>, vector<1x8x4xf32>
    %15 = vector.shape_cast %14 : vector<1x8x4xf32> to vector<8x4xf32>
    %c0_16 = arith.constant 0 : index
    %c0_17 = arith.constant 0 : index
    %c0_18 = arith.constant 0 : index
    %c0_19 = arith.constant 0 : index
    %16 = vector.load %arg3[%c0_16, %c0_17, %c0_18, %c0_19] : memref<1x2x4x128xf32, #tpu.memory_space<vmem>>, vector<1x1x4x128xf32>
    %17 = vector.shape_cast %16 : vector<1x1x4x128xf32> to vector<4x128xf32>
    %c0_20 = arith.constant 0 : index
    %c0_21 = arith.constant 0 : index
    %c0_22 = arith.constant 0 : index
    %c0_23 = arith.constant 0 : index
    %18 = vector.load %arg4[%c0_20, %c0_21, %c0_22, %c0_23] : memref<1x2x4x128xf32, #tpu.memory_space<vmem>>, vector<1x1x4x128xf32>
    %19 = vector.shape_cast %18 : vector<1x1x4x128xf32> to vector<4x128xf32>
    %20 = tpu.concatenate %17, %19 in 1 : vector<4x128xf32>, vector<4x128xf32> -> vector<4x256xf32>
    %21 = vector.extract_strided_slice %20 {offsets = [0, 1], sizes = [4, 128], strides = [1, 1]} : vector<4x256xf32> to vector<4x128xf32>
    %cst_24 = arith.constant dense<0.000000e+00> : vector<8x128xf32>
    %22 = tpu.matmul %15, %21, %cst_24 {dimension_numbers = #tpu.dot_dimension_numbers<[1], [0], [0], [1], [0, 0, 1, 1], [], []>} : vector<8x4xf32>, vector<4x128xf32>, vector<8x128xf32> -> vector<8x128xf32>
    %23 = arith.addf %13, %22 : vector<8x128xf32>
    %c0_25 = arith.constant 0 : index
    %c0_26 = arith.constant 0 : index
    %c0_27 = arith.constant 0 : index
    %24 = vector.load %arg5[%c0_25, %c0_26, %c0_27] : memref<3x8x4xf32, #tpu.memory_space<vmem>>, vector<1x8x4xf32>
    %25 = vector.shape_cast %24 : vector<1x8x4xf32> to vector<8x4xf32>
    %cst_28 = arith.constant dense<0.000000e+00> : vector<8x128xf32>
    %26 = tpu.matmul %25, %11, %cst_28 {dimension_numbers = #tpu.dot_dimension_numbers<[1], [0], [0], [1], [0, 0, 1, 1], [], []>} : vector<8x4xf32>, vector<4x128xf32>, vector<8x128xf32> -> vector<8x128xf32>
    %c1_29 = arith.constant 1 : index
    %c0_30 = arith.constant 0 : index
    %c0_31 = arith.constant 0 : index
    %27 = vector.load %arg5[%c1_29, %c0_30, %c0_31] : memref<3x8x4xf32, #tpu.memory_space<vmem>>, vector<1x8x4xf32>
    %28 = vector.shape_cast %27 : vector<1x8x4xf32> to vector<8x4xf32>
    %cst_32 = arith.constant dense<0.000000e+00> : vector<8x128xf32>
    %29 = tpu.matmul %28, %21, %cst_32 {dimension_numbers = #tpu.dot_dimension_numbers<[1], [0], [0], [1], [0, 0, 1, 1], [], []>} : vector<8x4xf32>, vector<4x128xf32>, vector<8x128xf32> -> vector<8x128xf32>
    %30 = arith.addf %26, %29 : vector<8x128xf32>
    %c2_33 = arith.constant 2 : index
    %c0_34 = arith.constant 0 : index
    %c0_35 = arith.constant 0 : index
    %31 = vector.load %arg5[%c2_33, %c0_34, %c0_35] : memref<3x8x4xf32, #tpu.memory_space<vmem>>, vector<1x8x4xf32>
    %32 = vector.shape_cast %31 : vector<1x8x4xf32> to vector<8x4xf32>
    %c0_36 = arith.constant 0 : index
    %c1_37 = arith.constant 1 : index
    %c0_38 = arith.constant 0 : index
    %c0_39 = arith.constant 0 : index
    %33 = vector.load %arg3[%c0_36, %c1_37, %c0_38, %c0_39] : memref<1x2x4x128xf32, #tpu.memory_space<vmem>>, vector<1x1x4x128xf32>
    %34 = vector.shape_cast %33 : vector<1x1x4x128xf32> to vector<4x128xf32>
    %c0_40 = arith.constant 0 : index
    %c1_41 = arith.constant 1 : index
    %c0_42 = arith.constant 0 : index
    %c0_43 = arith.constant 0 : index
    %35 = vector.load %arg4[%c0_40, %c1_41, %c0_42, %c0_43] : memref<1x2x4x128xf32, #tpu.memory_space<vmem>>, vector<1x1x4x128xf32>
    %36 = vector.shape_cast %35 : vector<1x1x4x128xf32> to vector<4x128xf32>
    %37 = tpu.concatenate %34, %36 in 1 : vector<4x128xf32>, vector<4x128xf32> -> vector<4x256xf32>
    %38 = vector.extract_strided_slice %37 {offsets = [0, 1], sizes = [4, 128], strides = [1, 1]} : vector<4x256xf32> to vector<4x128xf32>
    %cst_44 = arith.constant dense<0.000000e+00> : vector<8x128xf32>
    %39 = tpu.matmul %32, %38, %cst_44 {dimension_numbers = #tpu.dot_dimension_numbers<[1], [0], [0], [1], [0, 0, 1, 1], [], []>} : vector<8x4xf32>, vector<4x128xf32>, vector<8x128xf32> -> vector<8x128xf32>
    %40 = arith.addf %30, %39 : vector<8x128xf32>
    %c1_i32 = arith.constant 1 : i32
    %41 = arith.muli %arg1, %c1_i32 : i32
    %42 = arith.addi %41, %arg2 : i32
    %c128_i32 = arith.constant 128 : i32
    %43 = arith.muli %42, %c128_i32 : i32
    %44 = tpu.iota {dimensions = array<i32: 1>} : vector<1x128xi32>
    %45 = vector.broadcast %43 : i32 to vector<1x128xi32>
    %46 = arith.addi %44, %45 : vector<1x128xi32>
    %c8_i32 = arith.constant 8 : i32
    %47 = vector.broadcast %c8_i32 : i32 to vector<1x128xi32>
    %48 = arith.cmpi slt, %46, %47 : vector<1x128xi32>
    %49 = arith.extui %48 : vector<1x128xi1> to vector<1x128xi32>
    %50 = arith.sitofp %49 : vector<1x128xi32> to vector<1x128xf32>
    %51 = vector.broadcast %50 : vector<1x128xf32> to vector<8x128xf32>
    %52 = arith.mulf %23, %51 : vector<8x128xf32>
    %53 = vector.broadcast %50 : vector<1x128xf32> to vector<8x128xf32>
    %54 = arith.mulf %40, %53 : vector<8x128xf32>
    %c0_45 = arith.constant 0 : index
    %c0_46 = arith.constant 0 : index
    %c0_47 = arith.constant 0 : index
    %c0_48 = arith.constant 0 : index
    %55 = vector.load %arg6[%c0_45, %c0_46, %c0_47, %c0_48] : memref<1x1x8x1xf32, #tpu.memory_space<vmem>>, vector<1x1x8x1xf32>
    %56 = vector.shape_cast %55 : vector<1x1x8x1xf32> to vector<8x1xf32>
    %cst_49 = arith.constant dense<0.000000e+00> : vector<8xf32>
    %57 = vector.multi_reduction <add>, %52, %cst_49 [1] : vector<8x128xf32> to vector<8xf32>
    %58 = vector.shape_cast %57 : vector<8xf32> to vector<8x1xf32>
    %cst_50 = arith.constant dense<0.000000e+00> : vector<8xf32>
    %59 = vector.multi_reduction <add>, %54, %cst_50 [1] : vector<8x128xf32> to vector<8xf32>
    %60 = vector.shape_cast %59 : vector<8xf32> to vector<8x1xf32>
    %61 = arith.addf %58, %60 : vector<8x1xf32>
    %62 = arith.addf %56, %61 : vector<8x1xf32>
    %c0_51 = arith.constant 0 : index
    %c0_52 = arith.constant 0 : index
    %c0_53 = arith.constant 0 : index
    %c0_54 = arith.constant 0 : index
    %63 = vector.load %arg6[%c0_51, %c0_52, %c0_53, %c0_54] : memref<1x1x8x1xf32, #tpu.memory_space<vmem>>, vector<1x1x8x1xf32>
    %64 = vector.shape_cast %63 : vector<1x1x8x1xf32> to vector<8x1xf32>
    %65 = vector.shape_cast %62 : vector<8x1xf32> to vector<1x1x8x1xf32>
    tpu.vector_store %arg6[%c0_51, %c0_52, %c0_53, %c0_54], %65 {strides = array<i32>} : memref<1x1x8x1xf32, #tpu.memory_space<vmem>>, vector<1x1x8x1xf32>,
    %c0_55 = arith.constant 0 : index
    %c0_56 = arith.constant 0 : index
    %c0_57 = arith.constant 0 : index
    %c0_58 = arith.constant 0 : index
    %66 = vector.load %arg7[%c0_55, %c0_56, %c0_57, %c0_58] : memref<1x1x8x1xf32, #tpu.memory_space<vmem>>, vector<1x1x8x1xf32>
    %67 = vector.shape_cast %66 : vector<1x1x8x1xf32> to vector<8x1xf32>
    %68 = arith.mulf %52, %52 : vector<8x128xf32>
    %cst_59 = arith.constant dense<0.000000e+00> : vector<8xf32>
    %69 = vector.multi_reduction <add>, %68, %cst_59 [1] : vector<8x128xf32> to vector<8xf32>
    %70 = vector.shape_cast %69 : vector<8xf32> to vector<8x1xf32>
    %71 = arith.mulf %54, %54 : vector<8x128xf32>
    %cst_60 = arith.constant dense<0.000000e+00> : vector<8xf32>
    %72 = vector.multi_reduction <add>, %71, %cst_60 [1] : vector<8x128xf32> to vector<8xf32>
    %73 = vector.shape_cast %72 : vector<8xf32> to vector<8x1xf32>
    %74 = arith.addf %70, %73 : vector<8x1xf32>
    %75 = arith.addf %67, %74 : vector<8x1xf32>
    %c0_61 = arith.constant 0 : index
    %c0_62 = arith.constant 0 : index
    %c0_63 = arith.constant 0 : index
    %c0_64 = arith.constant 0 : index
    %76 = vector.load %arg7[%c0_61, %c0_62, %c0_63, %c0_64] : memref<1x1x8x1xf32, #tpu.memory_space<vmem>>, vector<1x1x8x1xf32>
    %77 = vector.shape_cast %76 : vector<1x1x8x1xf32> to vector<8x1xf32>
    %78 = vector.shape_cast %75 : vector<8x1xf32> to vector<1x1x8x1xf32>
    tpu.vector_store %arg7[%c0_61, %c0_62, %c0_63, %c0_64], %78 {strides = array<i32>} : memref<1x1x8x1xf32, #tpu.memory_space<vmem>>, vector<1x1x8x1xf32>,
    return
  }
  func.func @transform_0(%arg0: i32, %arg1: i32, %arg2: i32) -> (i32, i32, i32, i32) {
    %c1_i32 = arith.constant 1 : i32
    %0 = arith.muli %arg1, %c1_i32 : i32
    %1 = arith.addi %0, %arg2 : i32
    %c0_i32 = arith.constant 0 : i32
    %c0_i32_0 = arith.constant 0 : i32
    %c0_i32_1 = arith.constant 0 : i32
    return %arg0, %c0_i32, %c0_i32_0, %1 : i32, i32, i32, i32
  }
  func.func @transform_1(%arg0: i32, %arg1: i32, %arg2: i32) -> (i32, i32, i32, i32) {
    %c1_i32 = arith.constant 1 : i32
    %0 = arith.muli %arg1, %c1_i32 : i32
    %1 = arith.addi %0, %arg2 : i32
    %c1_i32_0 = arith.constant 1 : i32
    %2 = arith.addi %1, %c1_i32_0 : i32
    %c1_i32_1 = arith.constant 1 : i32
    %3 = arith.muli %2, %c1_i32_1 : i32
    %c0_i32 = arith.constant 0 : i32
    %c0_i32_2 = arith.constant 0 : i32
    %c0_i32_3 = arith.constant 0 : i32
    return %arg0, %c0_i32, %c0_i32_2, %3 : i32, i32, i32, i32
  }
  func.func @transform_2(%arg0: i32, %arg1: i32, %arg2: i32) -> (i32, i32, i32) {
    %c0_i32 = arith.constant 0 : i32
    %c0_i32_0 = arith.constant 0 : i32
    %c0_i32_1 = arith.constant 0 : i32
    %c0_i32_2 = arith.constant 0 : i32
    return %c0_i32, %c0_i32_0, %c0_i32_1 : i32, i32, i32
  }
  func.func @transform_3(%arg0: i32, %arg1: i32, %arg2: i32) -> (i32, i32, i32, i32) {
    %c0_i32 = arith.constant 0 : i32
    %c0_i32_0 = arith.constant 0 : i32
    %c0_i32_1 = arith.constant 0 : i32
    return %arg0, %arg1, %c0_i32, %c0_i32_0 : i32, i32, i32, i32
  }
  func.func @transform_4(%arg0: i32, %arg1: i32, %arg2: i32) -> (i32, i32, i32, i32) {
    %c0_i32 = arith.constant 0 : i32
    %c0_i32_0 = arith.constant 0 : i32
    %c0_i32_1 = arith.constant 0 : i32
    return %arg0, %arg1, %c0_i32, %c0_i32_0 : i32, i32, i32, i32
  }
}

module attributes {stable_mosaic.version = 11 : i64} {
  func.func @norm_pool_kernel(%arg0: i32, %arg1: i32, %arg2: i32, %arg3: memref<1x2x4x128xf32, #tpu.memory_space<vmem>>, %arg4: memref<1x2x4x128xf32, #tpu.memory_space<vmem>>, %arg5: memref<3x8x4xf32, #tpu.memory_space<vmem>>, %arg6: memref<8x1xf32, #tpu.memory_space<vmem>>, %arg7: memref<1x8x128xf32, #tpu.memory_space<vmem>>) attributes {dimension_semantics = [#tpu.dimension_semantics<parallel>, #tpu.dimension_semantics<parallel>, #tpu.dimension_semantics<parallel>], iteration_bounds = array<i64: 2, 2, 1>, scalar_prefetch = 0 : i64, scratch_operands = 0 : i64, tpu.core_type = #tpu.core_type<tc>, window_params = [{transform_indices = @transform_0, window_bounds = array<i64: 1, 2, 4, 128>}, {transform_indices = @transform_1, window_bounds = array<i64: 1, 2, 4, 128>}, {pipeline_mode = #tpu.pipeline_mode<synchronous>, transform_indices = @transform_2, window_bounds = array<i64: 3, 8, 4>}, {pipeline_mode = #tpu.pipeline_mode<synchronous>, transform_indices = @transform_3, window_bounds = array<i64: 8, 1>}, {transform_indices = @transform_4, window_bounds = array<i64: 1, 8, 128>}]} {
    %c0 = arith.constant 0 : index
    %c0_0 = arith.constant 0 : index
    %c0_1 = arith.constant 0 : index
    %0 = vector.load %arg5[%c0, %c0_0, %c0_1] : memref<3x8x4xf32, #tpu.memory_space<vmem>>, vector<1x8x4xf32>
    %1 = vector.shape_cast %0 : vector<1x8x4xf32> to vector<8x4xf32>
    %c0_2 = arith.constant 0 : index
    %c0_3 = arith.constant 0 : index
    %c0_4 = arith.constant 0 : index
    %c0_5 = arith.constant 0 : index
    %2 = vector.load %arg3[%c0_2, %c0_3, %c0_4, %c0_5] : memref<1x2x4x128xf32, #tpu.memory_space<vmem>>, vector<1x1x4x128xf32>
    %3 = vector.shape_cast %2 : vector<1x1x4x128xf32> to vector<4x128xf32>
    %cst = arith.constant dense<0.000000e+00> : vector<8x128xf32>
    %4 = tpu.matmul %1, %3, %cst {dimension_numbers = #tpu.dot_dimension_numbers<[1], [0], [0], [1], [0, 0, 1, 1], [], []>} : vector<8x4xf32>, vector<4x128xf32>, vector<8x128xf32> -> vector<8x128xf32>
    %c1 = arith.constant 1 : index
    %c0_6 = arith.constant 0 : index
    %c0_7 = arith.constant 0 : index
    %5 = vector.load %arg5[%c1, %c0_6, %c0_7] : memref<3x8x4xf32, #tpu.memory_space<vmem>>, vector<1x8x4xf32>
    %6 = vector.shape_cast %5 : vector<1x8x4xf32> to vector<8x4xf32>
    %c0_8 = arith.constant 0 : index
    %c1_9 = arith.constant 1 : index
    %c0_10 = arith.constant 0 : index
    %c0_11 = arith.constant 0 : index
    %7 = vector.load %arg3[%c0_8, %c1_9, %c0_10, %c0_11] : memref<1x2x4x128xf32, #tpu.memory_space<vmem>>, vector<1x1x4x128xf32>
    %8 = vector.shape_cast %7 : vector<1x1x4x128xf32> to vector<4x128xf32>
    %cst_12 = arith.constant dense<0.000000e+00> : vector<8x128xf32>
    %9 = tpu.matmul %6, %8, %cst_12 {dimension_numbers = #tpu.dot_dimension_numbers<[1], [0], [0], [1], [0, 0, 1, 1], [], []>} : vector<8x4xf32>, vector<4x128xf32>, vector<8x128xf32> -> vector<8x128xf32>
    %10 = arith.addf %4, %9 : vector<8x128xf32>
    %c2 = arith.constant 2 : index
    %c0_13 = arith.constant 0 : index
    %c0_14 = arith.constant 0 : index
    %11 = vector.load %arg5[%c2, %c0_13, %c0_14] : memref<3x8x4xf32, #tpu.memory_space<vmem>>, vector<1x8x4xf32>
    %12 = vector.shape_cast %11 : vector<1x8x4xf32> to vector<8x4xf32>
    %c0_15 = arith.constant 0 : index
    %c0_16 = arith.constant 0 : index
    %c0_17 = arith.constant 0 : index
    %c0_18 = arith.constant 0 : index
    %13 = vector.load %arg3[%c0_15, %c0_16, %c0_17, %c0_18] : memref<1x2x4x128xf32, #tpu.memory_space<vmem>>, vector<1x1x4x128xf32>
    %14 = vector.shape_cast %13 : vector<1x1x4x128xf32> to vector<4x128xf32>
    %c0_19 = arith.constant 0 : index
    %c0_20 = arith.constant 0 : index
    %c0_21 = arith.constant 0 : index
    %c0_22 = arith.constant 0 : index
    %15 = vector.load %arg4[%c0_19, %c0_20, %c0_21, %c0_22] : memref<1x2x4x128xf32, #tpu.memory_space<vmem>>, vector<1x1x4x128xf32>
    %16 = vector.shape_cast %15 : vector<1x1x4x128xf32> to vector<4x128xf32>
    %17 = tpu.concatenate %14, %16 in 1 : vector<4x128xf32>, vector<4x128xf32> -> vector<4x256xf32>
    %18 = vector.extract_strided_slice %17 {offsets = [0, 1], sizes = [4, 128], strides = [1, 1]} : vector<4x256xf32> to vector<4x128xf32>
    %cst_23 = arith.constant dense<0.000000e+00> : vector<8x128xf32>
    %19 = tpu.matmul %12, %18, %cst_23 {dimension_numbers = #tpu.dot_dimension_numbers<[1], [0], [0], [1], [0, 0, 1, 1], [], []>} : vector<8x4xf32>, vector<4x128xf32>, vector<8x128xf32> -> vector<8x128xf32>
    %20 = arith.addf %10, %19 : vector<8x128xf32>
    %c0_24 = arith.constant 0 : index
    %c0_25 = arith.constant 0 : index
    %c0_26 = arith.constant 0 : index
    %21 = vector.load %arg5[%c0_24, %c0_25, %c0_26] : memref<3x8x4xf32, #tpu.memory_space<vmem>>, vector<1x8x4xf32>
    %22 = vector.shape_cast %21 : vector<1x8x4xf32> to vector<8x4xf32>
    %cst_27 = arith.constant dense<0.000000e+00> : vector<8x128xf32>
    %23 = tpu.matmul %22, %8, %cst_27 {dimension_numbers = #tpu.dot_dimension_numbers<[1], [0], [0], [1], [0, 0, 1, 1], [], []>} : vector<8x4xf32>, vector<4x128xf32>, vector<8x128xf32> -> vector<8x128xf32>
    %c1_28 = arith.constant 1 : index
    %c0_29 = arith.constant 0 : index
    %c0_30 = arith.constant 0 : index
    %24 = vector.load %arg5[%c1_28, %c0_29, %c0_30] : memref<3x8x4xf32, #tpu.memory_space<vmem>>, vector<1x8x4xf32>
    %25 = vector.shape_cast %24 : vector<1x8x4xf32> to vector<8x4xf32>
    %cst_31 = arith.constant dense<0.000000e+00> : vector<8x128xf32>
    %26 = tpu.matmul %25, %18, %cst_31 {dimension_numbers = #tpu.dot_dimension_numbers<[1], [0], [0], [1], [0, 0, 1, 1], [], []>} : vector<8x4xf32>, vector<4x128xf32>, vector<8x128xf32> -> vector<8x128xf32>
    %27 = arith.addf %23, %26 : vector<8x128xf32>
    %c2_32 = arith.constant 2 : index
    %c0_33 = arith.constant 0 : index
    %c0_34 = arith.constant 0 : index
    %28 = vector.load %arg5[%c2_32, %c0_33, %c0_34] : memref<3x8x4xf32, #tpu.memory_space<vmem>>, vector<1x8x4xf32>
    %29 = vector.shape_cast %28 : vector<1x8x4xf32> to vector<8x4xf32>
    %c0_35 = arith.constant 0 : index
    %c1_36 = arith.constant 1 : index
    %c0_37 = arith.constant 0 : index
    %c0_38 = arith.constant 0 : index
    %30 = vector.load %arg3[%c0_35, %c1_36, %c0_37, %c0_38] : memref<1x2x4x128xf32, #tpu.memory_space<vmem>>, vector<1x1x4x128xf32>
    %31 = vector.shape_cast %30 : vector<1x1x4x128xf32> to vector<4x128xf32>
    %c0_39 = arith.constant 0 : index
    %c1_40 = arith.constant 1 : index
    %c0_41 = arith.constant 0 : index
    %c0_42 = arith.constant 0 : index
    %32 = vector.load %arg4[%c0_39, %c1_40, %c0_41, %c0_42] : memref<1x2x4x128xf32, #tpu.memory_space<vmem>>, vector<1x1x4x128xf32>
    %33 = vector.shape_cast %32 : vector<1x1x4x128xf32> to vector<4x128xf32>
    %34 = tpu.concatenate %31, %33 in 1 : vector<4x128xf32>, vector<4x128xf32> -> vector<4x256xf32>
    %35 = vector.extract_strided_slice %34 {offsets = [0, 1], sizes = [4, 128], strides = [1, 1]} : vector<4x256xf32> to vector<4x128xf32>
    %cst_43 = arith.constant dense<0.000000e+00> : vector<8x128xf32>
    %36 = tpu.matmul %29, %35, %cst_43 {dimension_numbers = #tpu.dot_dimension_numbers<[1], [0], [0], [1], [0, 0, 1, 1], [], []>} : vector<8x4xf32>, vector<4x128xf32>, vector<8x128xf32> -> vector<8x128xf32>
    %37 = arith.addf %27, %36 : vector<8x128xf32>
    %c0_44 = arith.constant 0 : index
    %c0_45 = arith.constant 0 : index
    %38 = vector.load %arg6[%c0_44, %c0_45] : memref<8x1xf32, #tpu.memory_space<vmem>>, vector<8x1xf32>
    %39 = vector.broadcast %38 : vector<8x1xf32> to vector<8x128xf32>
    %40 = arith.addf %20, %39 : vector<8x128xf32>
    %cst_46 = arith.constant 0.000000e+00 : f32
    %41 = vector.broadcast %cst_46 : f32 to vector<8x128xf32>
    %42 = arith.maximumf %40, %41 : vector<8x128xf32>
    %43 = vector.broadcast %38 : vector<8x1xf32> to vector<8x128xf32>
    %44 = arith.addf %37, %43 : vector<8x128xf32>
    %cst_47 = arith.constant 0.000000e+00 : f32
    %45 = vector.broadcast %cst_47 : f32 to vector<8x128xf32>
    %46 = arith.maximumf %44, %45 : vector<8x128xf32>
    %47 = arith.maximumf %42, %46 : vector<8x128xf32>
    %c0_48 = arith.constant 0 : index
    %c0_49 = arith.constant 0 : index
    %c0_50 = arith.constant 0 : index
    %48 = vector.load %arg7[%c0_48, %c0_49, %c0_50] : memref<1x8x128xf32, #tpu.memory_space<vmem>>, vector<1x8x128xf32>
    %49 = vector.shape_cast %48 : vector<1x8x128xf32> to vector<8x128xf32>
    %50 = vector.shape_cast %47 : vector<8x128xf32> to vector<1x8x128xf32>
    tpu.vector_store %arg7[%c0_48, %c0_49, %c0_50], %50 {strides = array<i32>} : memref<1x8x128xf32, #tpu.memory_space<vmem>>, vector<1x8x128xf32>,
    return
  }
  func.func @transform_0(%arg0: i32, %arg1: i32, %arg2: i32) -> (i32, i32, i32, i32) {
    %c1_i32 = arith.constant 1 : i32
    %0 = arith.muli %arg1, %c1_i32 : i32
    %1 = arith.addi %0, %arg2 : i32
    %c0_i32 = arith.constant 0 : i32
    %c0_i32_0 = arith.constant 0 : i32
    %c0_i32_1 = arith.constant 0 : i32
    return %arg0, %c0_i32, %c0_i32_0, %1 : i32, i32, i32, i32
  }
  func.func @transform_1(%arg0: i32, %arg1: i32, %arg2: i32) -> (i32, i32, i32, i32) {
    %c1_i32 = arith.constant 1 : i32
    %0 = arith.muli %arg1, %c1_i32 : i32
    %1 = arith.addi %0, %arg2 : i32
    %c1_i32_0 = arith.constant 1 : i32
    %2 = arith.addi %1, %c1_i32_0 : i32
    %c1_i32_1 = arith.constant 1 : i32
    %3 = arith.muli %2, %c1_i32_1 : i32
    %c0_i32 = arith.constant 0 : i32
    %c0_i32_2 = arith.constant 0 : i32
    %c0_i32_3 = arith.constant 0 : i32
    return %arg0, %c0_i32, %c0_i32_2, %3 : i32, i32, i32, i32
  }
  func.func @transform_2(%arg0: i32, %arg1: i32, %arg2: i32) -> (i32, i32, i32) {
    %c0_i32 = arith.constant 0 : i32
    %c0_i32_0 = arith.constant 0 : i32
    %c0_i32_1 = arith.constant 0 : i32
    %c0_i32_2 = arith.constant 0 : i32
    return %c0_i32, %c0_i32_0, %c0_i32_1 : i32, i32, i32
  }
  func.func @transform_3(%arg0: i32, %arg1: i32, %arg2: i32) -> (i32, i32) {
    %c0_i32 = arith.constant 0 : i32
    %c0_i32_0 = arith.constant 0 : i32
    %c0_i32_1 = arith.constant 0 : i32
    return %c0_i32, %c0_i32_0 : i32, i32
  }
  func.func @transform_4(%arg0: i32, %arg1: i32, %arg2: i32) -> (i32, i32, i32) {
    %c1_i32 = arith.constant 1 : i32
    %0 = arith.muli %arg1, %c1_i32 : i32
    %1 = arith.addi %0, %arg2 : i32
    %c0_i32 = arith.constant 0 : i32
    %c0_i32_0 = arith.constant 0 : i32
    return %arg0, %c0_i32, %1 : i32, i32, i32
  }
}

</mosaic_0001>

<bundles_post_ra>
// kernel: ti_child_block.2
= control target key start
LH: loop header
LB: loop body
LE: loop exit
PB: predicated region body
PF: predicated region fallthrough
CT: control target
= control target key end

     0   :  { %s956_s15 = smov 0   ;;  %s958_s16 = smov 0   ;;  %s1118_s0 = inlined_call_operand.vmem [shape: f32[2,2,4,384], index: 0, kind: input, shape index: {}, may-alias: {0,1}]   ;;  %s1119_s1 = inlined_call_operand.vmem [shape: f32[2,2,4,384], index: 1, kind: input, shape index: {}, may-alias: {0,1}]   ;;  %s1120_s2 = inlined_call_operand.vmem [shape: f32[3,8,4], index: 2, kind: input, shape index: {}]   ;;  %s1121_s3 = inlined_call_operand.vmem [shape: f32[2,2,8,1], index: 3, kind: output, shape index: {0}]   ;;  %s1122_s4 = inlined_call_operand.vmem [shape: f32[2,2,8,1], index: 4, kind: output, shape index: {1}]  }
   0x1   :  { %s960_s17 = smov 0   ;;  %s962_s18 = smov 0  }
   0x2   :  { %s964_s19 = smov 0   ;;  %s966_s20 = smov 0  }
   0x3   :  { %s968_s21 = smov 0   ;;  %s970_s22 = smov 0  }
   0x4   :  { %s972_s23 = smov 0  }
   0x5 LB: > { %s30_s24 = sadd.s32 1, %s919_s21  ;;  %s34_s25 = sadd.s32 1, %s923_s22  ;;  %s927_s23 = sphi %s972_s23, %s15_s23   ;;  %s923_s22 = sphi %s970_s22, %s1132_s22   ;;  %s919_s21 = sphi %s968_s21, %s1131_s21   ;;  %s915_s20 = sphi %s966_s20, %s1130_s20   ;;  %s911_s19 = sphi %s964_s19, %s1129_s19   ;;  %s907_s18 = sphi %s962_s18, %s1128_s18   ;;  %s903_s17 = sphi %s960_s17, %s1127_s17   ;;  %s899_s16 = sphi %s958_s16, %s1126_s16   ;;  %s895_s15 = sphi %s956_s15, %s1125_s15  }
   0x6   : > { %p32_p0 = scmp.ge.s32.totalorder %s30_s24, 2  ;;  %p52_p1 = scmp.ne.s32.totalorder %s907_s18, %s903_s17 }
   0x7   : > { %p53_p2 = scmp.eq.s32.totalorder %s927_s23, 0  ;;  %s45_s5 = sadd.s32 1, %s907_s18 }
   0x8   : > { %s1006_s26 = scalar_select %p32_p0, 0, %s30_s24  }
   0x9   : > { %s1134_s25 = smov (!%p32_p0, %s34_s25), %s923_s22  ;;  %p1011_p3 = por %p53_p2, %p52_p1 }
   0xa   : > { %p36_p4 = scmp.ge.s32.totalorder %s1134_s25, 2  ;;  %s71_s28 = sadd.s32 1, %s1006_s26 }
   0xb   : > { %s41_s29 = ssub.s32 %s919_s21, %s1006_s26  ;;  %s73_s30 = ssub.s32 %s30_s24, %s71_s28 }
   0xc   : > { %s1136_s25 = smov (%p36_p4, %s1134_s25), 0  ;;  %p84_p5 = scmp.ne.s32.totalorder %s899_s16, %s895_s15 }
   0xd   : > { %s40_s6 = ssub.s32 %s923_s22, %s1136_s25  ;;  %s77_s7 = sadd.s32 1, %s899_s16 }
   0xe   : > { %s42_s8 = sor.u32 %s41_s29, %s40_s6  ;;  %s74_s9 = sor.u32 %s73_s30, %s40_s6 }
   0xf   : > { %p43_p6 = scmp.eq.s32.totalorder %s42_s8, 0  ;;  %p75_p7 = scmp.eq.s32.totalorder %s74_s9, 0 }
  0x10   : > { %p1028_p8 = por %p84_p5, %p53_p2  ;;  %p748_p9 = scmp.ge.s32.totalorder %s927_s23, 4 }
  0x11   : > { %s1033_s11 = scalar_select %p43_p6, %s907_s18, %s45_s5  }
  0x12   : > { %s1036_s12 = scalar_select %p75_p7, %s899_s16, %s77_s7  }
  0x13   : > { %190 = sbr.rel (%p748_p9) target bundleno = 42 (0x2a), region = 20 }
  0x18   : > { %193 = sbr.rel (!%p1011_p3) target bundleno = 33 (0x21), region = 24  ;;  %s195_s13 = sand.u32 (%p1011_p3), 1, %s907_s18  }
  0x19   : > { %s782_s14 = smul.u32 (%p1011_p3), 6, %s923_s22  ;;  %s749_s24 = sshll.u32 (%p1011_p3), %s195_s13, 3 }
  0x1a   : > { %s197_s7 = scalar_lea.vmem (%p1011_p3), [#allocation2], %s749_s24 }
  0x1b   : > { %s200_s28 = sadd.s32 (%p1011_p3), %s919_s21, %s782_s14 }
  0x1c   : > { %s750_s29 = sshll.u32 (%p1011_p3), %s200_s28, 2 }
  0x1d   : > { %s202_s5 = scalar_lea.vmem %s1118_s0, %s750_s29 }
  0x1e   : > { %v219_v0 = vld [vmem:[%s202_s5] sm:$0xf]  ;;  %v221_v1 = vld [vmem:[%s202_s5 + $0xc] sm:$0xf] }
  0x1f   : > { %220 = vst [vmem:[%s197_s7] sm:$0xf] %v219_v0 }
  0x20   : > { %222 = vst [vmem:[%s197_s7 + $0x4] sm:$0xf] %v221_v1 }
  0x21 PF: > { %250 = sbr.rel (!%p1028_p8) target bundleno = 42 (0x2a), region = 65  ;;  %s252_s27 = sand.u32 (%p1028_p8), 1, %s899_s16  }
  0x22   : > { %s643_s8 = smul.u32 (%p1028_p8), 6, %s923_s22  ;;  %s751_s9 = sshll.u32 (%p1028_p8), %s252_s27, 3 }
  0x23   : > { %s254_s24 = scalar_lea.vmem (%p1028_p8), [#allocation3], %s751_s9 }
  0x24   : > { %s644_s13 = sadd.s32 (%p1028_p8), %s919_s21, %s643_s8 }
  0x25   : > { %s752_s14 = sshll.u32 (%p1028_p8), %s644_s13, 2 }
  0x26   : > { %s646_s29 = scalar_lea.vmem %s1119_s1, %s752_s14 }
  0x27   : > { %v753_v2 = vld [vmem:[%s646_s29 + $0x4] sm:$0xf]  ;;  %v754_v3 = vld [vmem:[%s646_s29 + $0x10] sm:$0xf] }
  0x28   : > { %278 = vst [vmem:[%s254_s24] sm:$0xf] %v753_v2 }
  0x29   : > { %280 = vst [vmem:[%s254_s24 + $0x4] sm:$0xf] %v754_v3 }
  0x2a PF: > { %p755_p10 = scmp.ge.s32.totalorder %s927_s23, 1  ;;  %p307_p11 = scmp.lt.s32.totalorder %s927_s23, 5 }
  0x2c   : > { %p308_p12 = pnand %p755_p10, %p307_p11 }
  0x2d   : > { %s314_s10 = sand.u32 (!%p308_p12), 1, %s903_s17   ;;  %s321_s5 = sand.u32 (!%p308_p12), 1, %s895_s15  }
  0x2e   : > { %311 = sbr.rel (%p308_p12) target bundleno = 442 (0x1ba), region = 106  ;;  %s756_s6 = sshll.u32 (!%p308_p12), %s314_s10, 3 }
  0x2f   : > { %s316_s7 = scalar_lea.vmem (!%p308_p12), [#allocation2], %s756_s6  ;;  %s757_s27 = sshll.u32 (!%p308_p12), %s321_s5, 3 }
  0x30   : > { %s929_s8 = smov (!%p308_p12), 127   ;;  %s323_s9 = scalar_lea.vmem (!%p308_p12), [#allocation3], %s757_s27 }
  0x31   : > { %s778_s29 = sshll.u32 (!%p308_p12), %s911_s19, 7  ;;  %p364_p13 = scmp.lt.s32.totalorder (!%p308_p12), %s915_s20, 1 }
  0x32   : > { %p366_p0 = scmp.lt.s32.totalorder (!%p308_p12), %s911_s19, 1 }
  0x33   : > { %v763_v4 = vld [vmem:[%s316_s7 + $0x4] sm:$0xf]  ;;  %v388_v5 = vld [vmem:[%s316_s7] sm:$0xf]  ;;  %v775_v6 = vld [vmem:[%s323_s9 + $0x4] sm:$0xf]  ;;  %v556_v17 = vlaneseq  ;;  %v558_v20 = vstv %s778_s29 }
  0x34   : > { %526 = vrot.lane.b32.xlu1 %v763_v4, %s929_s8  ;;  %451 = vrot.lane.b32.xlu0 %v388_v5, %s929_s8  ;;  %v449_v7 = vld [vmem:[%s323_s9] sm:$0xf]  ;;  %vm397_vm0 = vcmask 1043456   ;;  %v762_v8 = vld [vmem:[%s1120_s2 + $0x8] sm:$0xff]  ;;  %vm393_vm1 = vcmask 31744   ;;  %vm455_vm2 = vcmask 1039360  }
  0x35   : > { %764 = vmatpush.msk.msra.mxu0 %vm397_vm0, %v763_v4  ;;  %766 = vmatpush.msk.msra.mxu1 %vm397_vm0, %v388_v5  ;;  %v387_v9 = vld [vmem:[%s1120_s2] sm:$0xff]  ;;  %v768_v14 = vld [vmem:[%s1120_s2 + $0x10] sm:$0xff]  ;;  %v557_v19 = vand.u32 127, %v556_v17  ;;  %v930_v26 = vmov 0.0   ;;  %s1138_s20 = smov (!%p364_p13, %s915_s20), 1  ;;  %s1140_s19 = smov (!%p366_p0, %s911_s19), 1 }
  0x36   : > { %765 = vmatmul.msk.f32.vlgmr.msra.gmra.mxu0 %vm393_vm1, %v762_v8  ;;  %767 = vmatmul.msk.f32.vlgmr.msra.gmra.mxu1 %vm393_vm1, %v387_v9  ;;  %s758_s24 = sshll.u32 %s1138_s20, 1  ;;  %vm384_vm4 = vcmask 7168  }
  0x37   : > { %773 = vmatpush.msk.msrb.mxu0 %vm397_vm0, %v763_v4  ;;  %v559_v22 = vadd.s32 %v558_v20, %v557_v19  ;;  %s369_s10 = sadd.s32 %s758_s24, %s1140_s19 }
  0x38   : > { %s759_s6 = sshll.u32 %s369_s10, 3 }
  0x39   : > { %vm560_vm3 = vcmp.lt.s32.totalorder %v559_v22, 8  ;;  %s379_s27 = scalar_lea.vmem %s1122_s4, %s759_s6  ;;  %s371_s13 = scalar_lea.vmem %s1121_s3, %s759_s6 }
  0x3a   : > { %v779_v27 = vsel %vm560_vm3, 1.0, %v930_v26  ;;  %386 = vst.msk [vmem:[%s379_s27] sm:$0xff] %vm384_vm4, %v930_v26 }
  0x3b   : > { %385 = vst.msk [vmem:[%s371_s13] sm:$0xff] %vm384_vm4, %v930_v26 }
  0x3c   : > { %528 = vrot.lane.b32.xlu1 %v775_v6, %s929_s8  ;;  %453 = vrot.lane.b32.xlu0 %v449_v7, %s929_s8 }
  0x3e   : > { %774 = vmatmul.msk.f32.vlgmr.msrb.gmra.mxu0 %vm393_vm1, %v387_v9 }
  0x41   : > { %v574_v39 = vld [vmem:[%s379_s27] sm:$0xff] }
  0x42   : > { %v565_v43 = vld [vmem:[%s371_s13] sm:$0xff] }
  0xa6   : > { %v527_v10 = vpop.permute.xlu1 %526  ;;  %v452_v11 = vpop.permute.xlu0 %451 }
  0xae   : > { %v529_v12 = vpop.permute.xlu1 %528  ;;  %v454_v13 = vpop.permute.xlu0 %453 }
  0xaf   : > { %v456_v15 = vsel %vm455_vm2, %v452_v11, %v454_v13  ;;  %v530_v16 = vsel %vm455_vm2, %v527_v10, %v529_v12 }
  0xb0   : > { %769 = vmatpush.msk.msra.mxu2 %vm397_vm0, %v456_v15  ;;  %771 = vmatpush.msk.msra.mxu3 %vm397_vm0, %v456_v15 }
  0xb1   : > { %776 = vmatpush.msk.msrb.mxu1 %vm397_vm0, %v530_v16  ;;  %770 = vmatmul.msk.f32.vlgmr.msra.gmra.mxu2 %vm393_vm1, %v768_v14 }
  0xb2   : > { %772 = vmatmul.msk.f32.vlgmr.msra.gmra.mxu3 %vm393_vm1, %v762_v8  ;;  %777 = vmatmul.msk.f32.vlgmr.msrb.gmra.mxu1 %vm393_vm1, %v768_v14 }
  0xb3   : > { %v418_v18 = vpop.f32.mrf.mxu0  ;;  %v444_v21 = vpop.f32.mrf.mxu1 }
  0xb4   : > { %v445_v23 = vadd.f32 %v444_v21, %v418_v18 }
  0xbb   : > { %v520_v24 = vpop.f32.mrf.mxu0 }
 0x12f   : > { %v550_v30 = vpop.f32.mrf.mxu1 }
 0x134   : > { %v479_v25 = vpop.f32.mrf.mxu2 }
 0x135   : > { %v482_v28 = vadd.f32 %v479_v25, %v445_v23  ;;  %v500_v29 = vpop.f32.mrf.mxu3 }
 0x136   : > { %v521_v31 = vadd.f32 %v520_v24, %v500_v29 }
 0x137   : > { %v563_v32 = vmul.f32 %v779_v27, %v482_v28 }
 0x138   : > { %v553_v33 = vadd.f32 %v550_v30, %v521_v31 }
 0x139   : > { %566 = vadd.xlane.f32.xlu2 %v563_v32  ;;  %v575_v34 = vmul.f32 %v563_v32, %v563_v32 }
 0x13a   : > { %v564_v35 = vmul.f32 %v779_v27, %v553_v33 }
 0x13b   : > { %576 = vadd.xlane.f32.xlu0 %v575_v34 }
 0x13c   : > { %v578_v36 = vmul.f32 %v564_v35, %v564_v35 }
 0x13e   : > { %579 = vadd.xlane.f32.xlu1 %v578_v36 }
 0x141   : > { %568 = vadd.xlane.f32.xlu2 %v564_v35 }
 0x1ac   : > { %v567_v37 = vpop.xlane.xlu2 %566 }
 0x1ae   : > { %v577_v38 = vpop.xlane.xlu0 %576 }
 0x1b1   : > { %v580_v40 = vpop.xlane.xlu1 %579 }
 0x1b2   : > { %v581_v41 = vadd.f32 %v580_v40, %v577_v38 }
 0x1b4   : > { %v582_v42 = vadd.f32 %v581_v41, %v574_v39  ;;  %v569_v44 = vpop.xlane.xlu2 %568 }
 0x1b5   : > { %v570_v45 = vadd.f32 %v569_v44, %v567_v37 }
 0x1b6   : > { %583 = vst.msk [vmem:[%s379_s27] sm:$0xff] %vm384_vm4, %v582_v42 }
 0x1b7   : > { %v571_v46 = vadd.f32 %v570_v45, %v565_v43 }
 0x1b9   : > { %573 = vst.msk [vmem:[%s371_s13] sm:$0xff] %vm384_vm4, %v571_v46 }
 0x1ba PF: > { %s15_s23 = sadd.s32 1, %s927_s23   ;;  %s1125_s15 = smov %s899_s16 }
 0x1bb   : > { %p12_p1 = scmp.ge.s32.totalorder %s15_s23, 6   ;;  %s1126_s16 = smov %s1036_s12 }
 0x1bc   : > { %s1127_s17 = smov %s907_s18  ;;  %s1128_s18 = smov %s1033_s11 }
 0x1bd   : > { %s1129_s19 = smov %s919_s21  ;;  %s1130_s20 = smov %s923_s22 }
 0x1be   : > { %s1131_s21 = smov %s1006_s26  ;;  %s1132_s22 = smov %s1136_s25 }
 0x1bf   :  { %14 = sbr.rel (!%p12_p1) target bundleno = 5 (0x5), region = 177 }

// kernel: ti_child_block.3
= control target key start
LH: loop header
LB: loop body
LE: loop exit
PB: predicated region body
PF: predicated region fallthrough
CT: control target
= control target key end

     0   :  { %s870_s15 = smov 0   ;;  %s872_s16 = smov 0   ;;  %s1031_s0 = inlined_call_operand.vmem [shape: f32[2,2,4,384], index: 0, kind: input, shape index: {}, may-alias: {0,1}]   ;;  %s1032_s1 = inlined_call_operand.vmem [shape: f32[2,2,4,384], index: 1, kind: input, shape index: {}, may-alias: {0,1}]   ;;  %s1033_s2 = inlined_call_operand.vmem [shape: f32[3,8,4], index: 2, kind: input, shape index: {}]   ;;  %s1034_s3 = inlined_call_operand.vmem [shape: f32[8,1], index: 3, kind: input, shape index: {}]   ;;  %s1035_s4 = inlined_call_operand.vmem [shape: f32[2,8,256], index: 4, kind: output, shape index: {}]  }
   0x1   :  { %s874_s17 = smov 0   ;;  %s876_s18 = smov 0  }
   0x2   :  { %s878_s19 = smov 0   ;;  %s880_s20 = smov 0  }
   0x3   :  { %s882_s21 = smov 0   ;;  %s884_s22 = smov 0  }
   0x4   :  { %s886_s23 = smov 0  }
   0x5 LB: > { %s29_s24 = sadd.s32 1, %s833_s21  ;;  %s33_s25 = sadd.s32 1, %s837_s22  ;;  %s841_s23 = sphi %s886_s23, %s14_s23   ;;  %s837_s22 = sphi %s884_s22, %s1045_s22   ;;  %s833_s21 = sphi %s882_s21, %s1044_s21   ;;  %s829_s20 = sphi %s880_s20, %s1043_s20   ;;  %s825_s19 = sphi %s878_s19, %s1042_s19   ;;  %s821_s18 = sphi %s876_s18, %s1041_s18   ;;  %s817_s17 = sphi %s874_s17, %s1040_s17   ;;  %s813_s16 = sphi %s872_s16, %s1039_s16   ;;  %s809_s15 = sphi %s870_s15, %s1038_s15  }
   0x6   : > { %p31_p0 = scmp.ge.s32.totalorder %s29_s24, 2  ;;  %p51_p1 = scmp.ne.s32.totalorder %s821_s18, %s817_s17 }
   0x7   : > { %p52_p2 = scmp.eq.s32.totalorder %s841_s23, 0  ;;  %s44_s5 = sadd.s32 1, %s821_s18 }
   0x8   : > { %s920_s26 = scalar_select %p31_p0, 0, %s29_s24  }
   0x9   : > { %s1047_s25 = smov (!%p31_p0, %s33_s25), %s837_s22  ;;  %p925_p3 = por %p52_p2, %p51_p1 }
   0xa   : > { %p35_p4 = scmp.ge.s32.totalorder %s1047_s25, 2  ;;  %s70_s28 = sadd.s32 1, %s920_s26 }
   0xb   : > { %s40_s29 = ssub.s32 %s833_s21, %s920_s26  ;;  %s72_s30 = ssub.s32 %s29_s24, %s70_s28 }
   0xc   : > { %s1049_s25 = smov (%p35_p4, %s1047_s25), 0  ;;  %p83_p5 = scmp.ne.s32.totalorder %s813_s16, %s809_s15 }
   0xd   : > { %s39_s6 = ssub.s32 %s837_s22, %s1049_s25  ;;  %s76_s7 = sadd.s32 1, %s813_s16 }
   0xe   : > { %s41_s8 = sor.u32 %s40_s29, %s39_s6  ;;  %s73_s9 = sor.u32 %s72_s30, %s39_s6 }
   0xf   : > { %p42_p6 = scmp.eq.s32.totalorder %s41_s8, 0  ;;  %p74_p7 = scmp.eq.s32.totalorder %s73_s9, 0 }
  0x10   : > { %p942_p8 = por %p83_p5, %p52_p2  ;;  %p664_p9 = scmp.ge.s32.totalorder %s841_s23, 4 }
  0x11   : > { %s947_s11 = scalar_select %p42_p6, %s821_s18, %s44_s5  }
  0x12   : > { %s950_s12 = scalar_select %p74_p7, %s813_s16, %s76_s7  }
  0x13   : > { %187 = sbr.rel (%p664_p9) target bundleno = 42 (0x2a), region = 24 }
  0x18   : > { %190 = sbr.rel (!%p925_p3) target bundleno = 33 (0x21), region = 28  ;;  %s192_s13 = sand.u32 (%p925_p3), 1, %s821_s18  }
  0x19   : > { %s694_s14 = smul.u32 (%p925_p3), 6, %s837_s22  ;;  %s665_s24 = sshll.u32 (%p925_p3), %s192_s13, 3 }
  0x1a   : > { %s194_s7 = scalar_lea.vmem (%p925_p3), [#allocation2], %s665_s24 }
  0x1b   : > { %s197_s28 = sadd.s32 (%p925_p3), %s833_s21, %s694_s14 }
  0x1c   : > { %s666_s29 = sshll.u32 (%p925_p3), %s197_s28, 2 }
  0x1d   : > { %s199_s5 = scalar_lea.vmem %s1031_s0, %s666_s29 }
  0x1e   : > { %v216_v0 = vld [vmem:[%s199_s5] sm:$0xf]  ;;  %v218_v1 = vld [vmem:[%s199_s5 + $0xc] sm:$0xf] }
  0x1f   : > { %217 = vst [vmem:[%s194_s7] sm:$0xf] %v216_v0 }
  0x20   : > { %219 = vst [vmem:[%s194_s7 + $0x4] sm:$0xf] %v218_v1 }
  0x21 PF: > { %247 = sbr.rel (!%p942_p8) target bundleno = 42 (0x2a), region = 69  ;;  %s249_s27 = sand.u32 (%p942_p8), 1, %s813_s16  }
  0x22   : > { %s583_s8 = smul.u32 (%p942_p8), 6, %s837_s22  ;;  %s667_s9 = sshll.u32 (%p942_p8), %s249_s27, 3 }
  0x23   : > { %s251_s24 = scalar_lea.vmem (%p942_p8), [#allocation3], %s667_s9 }
  0x24   : > { %s584_s13 = sadd.s32 (%p942_p8), %s833_s21, %s583_s8 }
  0x25   : > { %s668_s14 = sshll.u32 (%p942_p8), %s584_s13, 2 }
  0x26   : > { %s586_s29 = scalar_lea.vmem %s1032_s1, %s668_s14 }
  0x27   : > { %v669_v2 = vld [vmem:[%s586_s29 + $0x4] sm:$0xf]  ;;  %v670_v3 = vld [vmem:[%s586_s29 + $0x10] sm:$0xf] }
  0x28   : > { %275 = vst [vmem:[%s251_s24] sm:$0xf] %v669_v2 }
  0x29   : > { %277 = vst [vmem:[%s251_s24 + $0x4] sm:$0xf] %v670_v3 }
  0x2a PF: > { %p671_p10 = scmp.ge.s32.totalorder %s841_s23, 1  ;;  %p304_p11 = scmp.lt.s32.totalorder %s841_s23, 5 }
  0x2c   : > { %p305_p12 = pnand %p671_p10, %p304_p11 }
  0x2d   : > { %s311_s10 = sand.u32 (!%p305_p12), 1, %s817_s17   ;;  %s318_s5 = sand.u32 (!%p305_p12), 1, %s809_s15  }
  0x2e   : > { %308 = sbr.rel (%p305_p12) target bundleno = 321 (0x141), region = 110  ;;  %s672_s6 = sshll.u32 (!%p305_p12), %s311_s10, 3 }
  0x2f   : > { %s313_s7 = scalar_lea.vmem (!%p305_p12), [#allocation2], %s672_s6  ;;  %s673_s27 = sshll.u32 (!%p305_p12), %s318_s5, 3 }
  0x30   : > { %s843_s8 = smov (!%p305_p12), 127   ;;  %s320_s9 = scalar_lea.vmem (!%p305_p12), [#allocation3], %s673_s27 }
  0x31   : > { %p355_p13 = scmp.lt.s32.totalorder (!%p305_p12), %s829_s20, 1  ;;  %p357_p0 = scmp.lt.s32.totalorder (!%p305_p12), %s825_s19, 1 }
  0x33   : > { %v677_v4 = vld [vmem:[%s313_s7 + $0x4] sm:$0xf]  ;;  %v365_v5 = vld [vmem:[%s313_s7] sm:$0xf]  ;;  %v689_v6 = vld [vmem:[%s320_s9 + $0x4] sm:$0xf] }
  0x34   : > { %503 = vrot.lane.b32.xlu1 %v677_v4, %s843_s8  ;;  %428 = vrot.lane.b32.xlu0 %v365_v5, %s843_s8  ;;  %v426_v7 = vld [vmem:[%s320_s9] sm:$0xf]  ;;  %vm374_vm0 = vcmask 1043456   ;;  %v676_v8 = vld [vmem:[%s1033_s2 + $0x8] sm:$0xff]  ;;  %vm370_vm1 = vcmask 31744   ;;  %v844_v11 = vmov 0  }
  0x35   : > { %678 = vmatpush.msk.msra.mxu0 %vm374_vm0, %v677_v4  ;;  %680 = vmatpush.msk.msra.mxu1 %vm374_vm0, %v365_v5  ;;  %v364_v9 = vld [vmem:[%s1033_s2] sm:$0xff]  ;;  %vm432_vm2 = vcmask 1039360   ;;  %v682_v16 = vld [vmem:[%s1033_s2 + $0x10] sm:$0xff]  ;;  %s1051_s20 = smov (!%p355_p13, %s829_s20), 1  ;;  %s1053_s19 = smov (!%p357_p0, %s825_s19), 1 }
  0x36   : > { %679 = vmatmul.msk.f32.vlgmr.msra.gmra.mxu0 %vm370_vm1, %v676_v8  ;;  %681 = vmatmul.msk.f32.vlgmr.msra.gmra.mxu1 %vm370_vm1, %v364_v9  ;;  %v531_v10 = vld [vmem:[%s1034_s3] sm:$0xff]  ;;  %s674_s10 = sshll.u32 %s1051_s20, 1 }
  0x37   : > { %687 = vmatpush.msk.msrb.mxu0 %vm374_vm0, %v677_v4  ;;  %769 = vset.pattern.permute.xlu2 %v844_v11  ;;  %s360_s6 = sadd.s32 %s674_s10, %s1053_s19 }
  0x38   : > { %770 = vset.pattern.permute.xlu0 %v844_v11  ;;  %534 = vperm.xlu2 %769, %v531_v10   ;;  %s675_s5 = sshll.u32 %s360_s6, 3 }
  0x3c   : > { %505 = vrot.lane.b32.xlu1 %v689_v6, %s843_s8  ;;  %430 = vrot.lane.b32.xlu0 %v426_v7, %s843_s8  ;;  %s362_s8 = scalar_lea.vmem %s1035_s4, %s675_s5 }
  0x3e   : > { %688 = vmatmul.msk.f32.vlgmr.msrb.gmra.mxu0 %vm370_vm1, %v364_v9 }
  0x92   : > { %v535_v24 = vpop.permute.xlu2 %534 }
  0xa6   : > { %v504_v12 = vpop.permute.xlu1 %503  ;;  %v429_v13 = vpop.permute.xlu0 %428 }
  0xae   : > { %v506_v14 = vpop.permute.xlu1 %505  ;;  %v431_v15 = vpop.permute.xlu0 %430 }
  0xaf   : > { %v433_v17 = vsel %vm432_vm2, %v429_v13, %v431_v15  ;;  %v507_v18 = vsel %vm432_vm2, %v504_v12, %v506_v14 }
  0xb0   : > { %683 = vmatpush.msk.msra.mxu2 %vm374_vm0, %v433_v17  ;;  %685 = vmatpush.msk.msra.mxu3 %vm374_vm0, %v433_v17 }
  0xb1   : > { %690 = vmatpush.msk.msrb.mxu1 %vm374_vm0, %v507_v18  ;;  %684 = vmatmul.msk.f32.vlgmr.msra.gmra.mxu2 %vm370_vm1, %v682_v16 }
  0xb2   : > { %686 = vmatmul.msk.f32.vlgmr.msra.gmra.mxu3 %vm370_vm1, %v676_v8  ;;  %691 = vmatmul.msk.f32.vlgmr.msrb.gmra.mxu1 %vm370_vm1, %v682_v16 }
  0xb3   : > { %v395_v19 = vpop.f32.mrf.mxu0  ;;  %v421_v20 = vpop.f32.mrf.mxu1 }
  0xb4   : > { %v422_v21 = vadd.f32 %v421_v20, %v395_v19 }
  0xbb   : > { %v497_v22 = vpop.f32.mrf.mxu0 }
 0x12f   : > { %v527_v27 = vpop.f32.mrf.mxu1 }
 0x134   : > { %v456_v23 = vpop.f32.mrf.mxu2 }
 0x135   : > { %v459_v25 = vadd.f32 %v456_v23, %v422_v21  ;;  %v477_v26 = vpop.f32.mrf.mxu3 }
 0x136   : > { %v498_v28 = vadd.f32 %v497_v22, %v477_v26 }
 0x137   : > { %v537_v29 = vadd.f32 %v535_v24, %v459_v25 }
 0x138   : > { %v530_v30 = vadd.f32 %v527_v27, %v498_v28 }
 0x139   : > { %v538_v32 = vmax.f32 %v537_v29, 0.0 }
 0x13a   : > { %v539_v31 = vadd.f32 %v535_v24, %v530_v30 }
 0x13c   : > { %v540_v33 = vmax.f32 %v539_v31, 0.0 }
 0x13e   : > { %v541_v34 = vmax.f32 %v538_v32, %v540_v33 }
 0x140   : > { %542 = vst [vmem:[%s362_s8] sm:$0xff] %v541_v34 }
 0x141 PF: > { %s14_s23 = sadd.s32 1, %s841_s23   ;;  %s1038_s15 = smov %s813_s16 }
 0x142   : > { %p11_p1 = scmp.ge.s32.totalorder %s14_s23, 6   ;;  %s1039_s16 = smov %s950_s12 }
 0x143   : > { %s1040_s17 = smov %s821_s18  ;;  %s1041_s18 = smov %s947_s11 }
 0x144   : > { %s1042_s19 = smov %s833_s21  ;;  %s1043_s20 = smov %s837_s22 }
 0x145   : > { %s1044_s21 = smov %s920_s26  ;;  %s1045_s22 = smov %s1049_s25 }
 0x146   :  { %13 = sbr.rel (!%p11_p1) target bundleno = 5 (0x5), region = 165 }

</bundles_post_ra>
